<compile_context>
chip_gen: v5e
topology: v5e:2x2
jax: 0.10.0
libtpu: 0.0.40
codegen_flags: <defaults>
</compile_context>

<pallas_src>
import functools
import math

import jax
import jax.numpy as jnp
from jax import lax
from jax.experimental import pallas as pl
from jax.experimental.pallas import tpu as pltpu


# ----------------------------------------------------------------------------
# Fused kernel: QKV projection -> batched per-head causal softmax attention ->
# output projection.  One (Bt, T, C) activation block per grid step.
# ----------------------------------------------------------------------------
def _causal_attn_kernel(x_ref, wqkv_ref, bqkv_ref, wp_ref, bp_ref, o_ref,
                        *, n_head, scale):
    bt, T, C = x_ref.shape
    hd = C // n_head
    R = bt * T                                   # rows fed to the MXU

    # Load f32 activations, cast to bf16 in-kernel (single HBM pass for x).
    x = x_ref[...].reshape(R, C).astype(wqkv_ref.dtype)            # (R, C) bf16

    # Fused QKV projection: one lane-dense bf16 MXU matmul, f32 accumulation.
    qkv = jnp.dot(x, wqkv_ref[...],
                  preferred_element_type=jnp.float32) + bqkv_ref[...]   # (R, 3C) f32
    q = qkv[:, 0 * C:1 * C] * scale              # fold softmax scale into q once
    k = qkv[:, 1 * C:2 * C]
    v = qkv[:, 2 * C:3 * C]

    # Split heads into a single leading batch dim (head-major), bf16 for the MXU.
    def split_heads(z):
        parts = [z[:, h * hd:(h + 1) * hd] for h in range(n_head)]     # (R, hd) each
        stacked = jnp.concatenate(parts, axis=0)                       # (n_head*R, hd)
        return stacked.reshape(n_head * bt, T, hd).astype(jnp.bfloat16)

    qh = split_heads(q)                          # (n_head*bt, T, hd)
    kh = split_heads(k)
    vh = split_heads(v)

    # Batched QK^T: bf16 operands, f32 accumulation.
    s = jnp.einsum('bqd,bkd->bqk', qh, kh,
                   preferred_element_type=jnp.float32)                 # (n_head*bt, T, T)

    # Causal mask built in-kernel (no HBM mask buffer).
    row = lax.broadcasted_iota(jnp.int32, (T, T), 0)
    col = lax.broadcasted_iota(jnp.int32, (T, T), 1)
    s = jnp.where((col <= row)[None], s, -1e30)  # masked_fill(mask == 0, -inf)

    # Numerically-stable softmax in f32; reciprocal on the EUP approx path.
    s = s - jnp.max(s, axis=-1, keepdims=True)
    p = jnp.exp(s)
    p = p * pl.reciprocal(jnp.sum(p, axis=-1, keepdims=True), approx=True)
    # TODO(synk): attn_drop is identity (eval mode); training dropout would use
    # pltpu.prng_seed + pltpu.prng_random_bits on p.

    # Batched PV: bf16 operands, f32 accumulation.
    y = jnp.einsum('bqk,bkd->bqd', p.astype(jnp.bfloat16), vh,
                   preferred_element_type=jnp.float32)                 # (n_head*bt, T, hd)

    # Merge heads back to (R, C) lane-dense layout (head-major columns).
    y_heads = y.reshape(n_head, R, hd)
    y2 = jnp.concatenate([y_heads[h] for h in range(n_head)], axis=-1)  # (R, C) f32

    # Output projection (bf16 MXU, f32 accumulation).  resid_drop is identity.
    out = jnp.dot(y2.astype(wp_ref.dtype), wp_ref[...],
                  preferred_element_type=jnp.float32) + bp_ref[...]
    o_ref[...] = out.reshape(bt, T, C).astype(o_ref.dtype)


# ----------------------------------------------------------------------------
# One-time parameter prep (hoisted out of the per-forward hot path).
# Weights stored (in, out): y = x @ W + b.
# ----------------------------------------------------------------------------
def prepare_params(params, dtype=jnp.bfloat16):
    wqkv = jnp.concatenate([params["wq"], params["wk"], params["wv"]],
                           axis=1).astype(dtype)                       # (C, 3C)
    bqkv = jnp.concatenate([params["bq"], params["bk"], params["bv"]]
                           ).reshape(1, -1).astype(jnp.float32)        # (1, 3C)
    wp = params["wp"].astype(dtype)                                    # (C, C)
    bp = params["bp"].reshape(1, -1).astype(jnp.float32)               # (1, C)
    return dict(wqkv=wqkv, bqkv=bqkv, wp=wp, bp=bp)


def _pick_batch_tile(B, T):
    """Largest divisor of B with Bt*T close to 256 rows, keeping >= 2 grid
    steps when B >= 2 so both v7x TensorCores get work."""
    target = max(1, 256 // max(T, 1))
    best = 1
    for d in range(1, B + 1):
        if B % d == 0 and d <= target and (B // d >= 2 or B < 2):
            best = d
    return best


def causal_self_attention(x, prepped, n_head, batch_tile=None):
    """x: (B, T, C) float32.  prepped: output of prepare_params()."""
    B, T, C = x.shape
    assert C % n_head == 0
    scale = 1.0 / math.sqrt(C // n_head)

    bt = _pick_batch_tile(B, T) if batch_tile is None else batch_tile
    assert B % bt == 0

    kernel = functools.partial(_causal_attn_kernel, n_head=n_head, scale=scale)
    return pl.pallas_call(
        kernel,
        out_shape=jax.ShapeDtypeStruct((B, T, C), jnp.float32),
        grid=(B // bt,),
        in_specs=[
            pl.BlockSpec((bt, T, C), lambda b: (b, 0, 0)),      # x (Bt batches/step)
            pl.BlockSpec((C, 3 * C), lambda b: (0, 0)),         # wqkv (VMEM-resident)
            pl.BlockSpec((1, 3 * C), lambda b: (0, 0)),         # bqkv (resident)
            pl.BlockSpec((C, C), lambda b: (0, 0)),             # wproj (resident)
            pl.BlockSpec((1, C), lambda b: (0, 0)),             # bproj (resident)
        ],
        out_specs=pl.BlockSpec((bt, T, C), lambda b: (b, 0, 0)),
        compiler_params=pltpu.CompilerParams(dimension_semantics=("parallel",)),
    )(x, prepped["wqkv"], prepped["bqkv"], prepped["wp"], prepped["bp"])


# ----------------------------------------------------------------------------
# Pure-JAX f32 reference mirroring the PyTorch module exactly.
# ----------------------------------------------------------------------------
def reference_forward(x, params, n_head):
    B, T, C = x.shape
    hd = C // n_head

    def split_heads(z):
        return jnp.transpose(z.reshape(B, T, n_head, hd), (0, 2, 1, 3))

    q = split_heads(x @ params["wq"] + params["bq"])
    k = split_heads(x @ params["wk"] + params["bk"])
    v = split_heads(x @ params["wv"] + params["bv"])

    att = (q @ jnp.swapaxes(k, -2, -1)) * (1.0 / math.sqrt(hd))
    mask = jnp.tril(jnp.ones((T, T), jnp.float32))[None, None]
    att = jnp.where(mask == 0, -jnp.inf, att)
    att = jax.nn.softmax(att, axis=-1)
    y = att @ v
    y = jnp.transpose(y, (0, 2, 1, 3)).reshape(B, T, C)
    return y @ params["wp"] + params["bp"]


# ----------------------------------------------------------------------------
# Deterministic parameter init (weights stored (in, out); same scale as Linear)
# ----------------------------------------------------------------------------
def init_params(key, n_embd):
    ks = jax.random.split(key, 8)
    s = 1.0 / math.sqrt(n_embd)

    def lin(kw, kb):
        return (s * jax.random.normal(kw, (n_embd, n_embd), jnp.float32),
                s * jax.random.normal(kb, (n_embd,), jnp.float32))

    wq, bq = lin(ks[0], ks[1])
    wk, bk = lin(ks[2], ks[3])
    wv, bv = lin(ks[4], ks[5])
    wp, bp = lin(ks[6], ks[7])
    return dict(wq=wq, bq=bq, wk=wk, bk=bk, wv=wv, bv=bv, wp=wp, bp=bp)


if __name__ == "__main__":
    key = jax.random.PRNGKey(0)
    pkey, xkey = jax.random.split(key)

    # Small shapes consistent with the module: block_size == T, C % n_head == 0.
    B, T, C, n_head = 2, 16, 128, 4
    params = init_params(pkey, C)
    x = jax.random.normal(xkey, (B, T, C), jnp.float32)

    prepped = prepare_params(params)             # one-time weight prep (not per call)
    out = causal_self_attention(x, prepped, n_head)
    out = jax.block_until_ready(out)
    assert out.shape == (B, T, C), out.shape

    ref = reference_forward(x, params, n_head)
    ref = jax.block_until_ready(ref)

    # bf16 MXU operands (weights, q/k/v, softmax probs) vs f32 reference.
    max_err = float(jnp.max(jnp.abs(out - ref)))
    assert jnp.allclose(out, ref, rtol=5e-2, atol=1e-1), max_err

    print("KERNEL_OK")
</pallas_src>

<mosaic_0001>
module attributes {stable_mosaic.version = 11 : i64} {
  func.func @_causal_attn_kernel(%arg0: i32, %arg1: memref<1x16x128xf32, #tpu.memory_space<vmem>>, %arg2: memref<128x384xbf16, #tpu.memory_space<vmem>>, %arg3: memref<1x384xf32, #tpu.memory_space<vmem>>, %arg4: memref<128x128xbf16, #tpu.memory_space<vmem>>, %arg5: memref<1x128xf32, #tpu.memory_space<vmem>>, %arg6: memref<1x16x128xf32, #tpu.memory_space<vmem>>) attributes {dimension_semantics = [#tpu.dimension_semantics<parallel>], iteration_bounds = array<i64: 2>, scalar_prefetch = 0 : i64, scratch_operands = 0 : i64, tpu.core_type = #tpu.core_type<tc>, window_params = [{transform_indices = @transform_0, window_bounds = array<i64: 1, 16, 128>}, {pipeline_mode = #tpu.pipeline_mode<synchronous>, transform_indices = @transform_1, window_bounds = array<i64: 128, 384>}, {pipeline_mode = #tpu.pipeline_mode<synchronous>, transform_indices = @transform_2, window_bounds = array<i64: 1, 384>}, {pipeline_mode = #tpu.pipeline_mode<synchronous>, transform_indices = @transform_3, window_bounds = array<i64: 128, 128>}, {pipeline_mode = #tpu.pipeline_mode<synchronous>, transform_indices = @transform_4, window_bounds = array<i64: 1, 128>}, {transform_indices = @transform_5, window_bounds = array<i64: 1, 16, 128>}]} {
    %c0 = arith.constant 0 : index
    %c0_0 = arith.constant 0 : index
    %c0_1 = arith.constant 0 : index
    %0 = vector.load %arg1[%c0, %c0_0, %c0_1] : memref<1x16x128xf32, #tpu.memory_space<vmem>>, vector<1x16x128xf32>
    %1 = vector.shape_cast %0 : vector<1x16x128xf32> to vector<16x128xf32>
    %2 = arith.truncf %1 : vector<16x128xf32> to vector<16x128xbf16>
    %c0_2 = arith.constant 0 : index
    %c0_3 = arith.constant 0 : index
    %3 = vector.load %arg2[%c0_2, %c0_3] : memref<128x384xbf16, #tpu.memory_space<vmem>>, vector<128x384xbf16>
    %cst = arith.constant dense<0.000000e+00> : vector<16x384xf32>
    %4 = tpu.matmul %2, %3, %cst {dimension_numbers = #tpu.dot_dimension_numbers<[1], [0], [0], [1], [0, 0, 1, 1], [], []>} : vector<16x128xbf16>, vector<128x384xbf16>, vector<16x384xf32> -> vector<16x384xf32>
    %c0_4 = arith.constant 0 : index
    %c0_5 = arith.constant 0 : index
    %5 = vector.load %arg3[%c0_4, %c0_5] : memref<1x384xf32, #tpu.memory_space<vmem>>, vector<1x384xf32>
    %6 = vector.broadcast %5 : vector<1x384xf32> to vector<16x384xf32>
    %7 = arith.addf %4, %6 : vector<16x384xf32>
    %8 = vector.extract_strided_slice %7 {offsets = [0, 0], sizes = [16, 128], strides = [1, 1]} : vector<16x384xf32> to vector<16x128xf32>
    %cst_6 = arith.constant 0.176776692 : f32
    %9 = vector.broadcast %cst_6 : f32 to vector<16x128xf32>
    %10 = arith.mulf %8, %9 : vector<16x128xf32>
    %11 = vector.extract_strided_slice %7 {offsets = [0, 128], sizes = [16, 128], strides = [1, 1]} : vector<16x384xf32> to vector<16x128xf32>
    %12 = vector.extract_strided_slice %7 {offsets = [0, 256], sizes = [16, 128], strides = [1, 1]} : vector<16x384xf32> to vector<16x128xf32>
    %13 = vector.extract_strided_slice %10 {offsets = [0, 0], sizes = [16, 32], strides = [1, 1]} : vector<16x128xf32> to vector<16x32xf32>
    %14 = vector.extract_strided_slice %10 {offsets = [0, 32], sizes = [16, 32], strides = [1, 1]} : vector<16x128xf32> to vector<16x32xf32>
    %15 = vector.extract_strided_slice %10 {offsets = [0, 64], sizes = [16, 32], strides = [1, 1]} : vector<16x128xf32> to vector<16x32xf32>
    %16 = vector.extract_strided_slice %10 {offsets = [0, 96], sizes = [16, 32], strides = [1, 1]} : vector<16x128xf32> to vector<16x32xf32>
    %17 = tpu.concatenate %13, %14, %15, %16 in 0 : vector<16x32xf32>, vector<16x32xf32>, vector<16x32xf32>, vector<16x32xf32> -> vector<64x32xf32>
    %18 = vector.shape_cast %17 : vector<64x32xf32> to vector<4x16x32xf32>
    %19 = arith.truncf %18 : vector<4x16x32xf32> to vector<4x16x32xbf16>
    %20 = vector.extract_strided_slice %11 {offsets = [0, 0], sizes = [16, 32], strides = [1, 1]} : vector<16x128xf32> to vector<16x32xf32>
    %21 = vector.extract_strided_slice %11 {offsets = [0, 32], sizes = [16, 32], strides = [1, 1]} : vector<16x128xf32> to vector<16x32xf32>
    %22 = vector.extract_strided_slice %11 {offsets = [0, 64], sizes = [16, 32], strides = [1, 1]} : vector<16x128xf32> to vector<16x32xf32>
    %23 = vector.extract_strided_slice %11 {offsets = [0, 96], sizes = [16, 32], strides = [1, 1]} : vector<16x128xf32> to vector<16x32xf32>
    %24 = tpu.concatenate %20, %21, %22, %23 in 0 : vector<16x32xf32>, vector<16x32xf32>, vector<16x32xf32>, vector<16x32xf32> -> vector<64x32xf32>
    %25 = vector.shape_cast %24 : vector<64x32xf32> to vector<4x16x32xf32>
    %26 = arith.truncf %25 : vector<4x16x32xf32> to vector<4x16x32xbf16>
    %27 = vector.extract_strided_slice %12 {offsets = [0, 0], sizes = [16, 32], strides = [1, 1]} : vector<16x128xf32> to vector<16x32xf32>
    %28 = vector.extract_strided_slice %12 {offsets = [0, 32], sizes = [16, 32], strides = [1, 1]} : vector<16x128xf32> to vector<16x32xf32>
    %29 = vector.extract_strided_slice %12 {offsets = [0, 64], sizes = [16, 32], strides = [1, 1]} : vector<16x128xf32> to vector<16x32xf32>
    %30 = vector.extract_strided_slice %12 {offsets = [0, 96], sizes = [16, 32], strides = [1, 1]} : vector<16x128xf32> to vector<16x32xf32>
    %31 = tpu.concatenate %27, %28, %29, %30 in 0 : vector<16x32xf32>, vector<16x32xf32>, vector<16x32xf32>, vector<16x32xf32> -> vector<64x32xf32>
    %32 = vector.shape_cast %31 : vector<64x32xf32> to vector<4x16x32xf32>
    %33 = arith.truncf %32 : vector<4x16x32xf32> to vector<4x16x32xbf16>
    "tpu.trace_start"() <{level = 10 : i32, message = "bqd,bkd->bqk"}> : () -> ()
    %cst_7 = arith.constant dense<0.000000e+00> : vector<4x16x16xf32>
    %34 = tpu.matmul %19, %26, %cst_7 {dimension_numbers = #tpu.dot_dimension_numbers<[2], [2], [1], [1], [0, 0, 0, 1, 1, 1], [0], [0]>} : vector<4x16x32xbf16>, vector<4x16x32xbf16>, vector<4x16x16xf32> -> vector<4x16x16xf32>
    "tpu.trace_stop"() : () -> ()
    %35 = tpu.iota {dimensions = array<i32: 0>} : vector<16x16xi32>
    %36 = tpu.iota {dimensions = array<i32: 1>} : vector<16x16xi32>
    %37 = arith.cmpi sle, %36, %35 : vector<16x16xi32>
    %38 = vector.shape_cast %37 : vector<16x16xi1> to vector<1x16x16xi1>
    %cst_8 = arith.constant -1.000000e+30 : f32
    %39 = vector.shape_cast %38 : vector<1x16x16xi1> to vector<1x16x16xi1>
    %40 = vector.broadcast %39 : vector<1x16x16xi1> to vector<4x16x16xi1>
    %41 = vector.broadcast %cst_8 : f32 to vector<4x16x16xf32>
    %42 = arith.select %40, %34, %41 : vector<4x16x16xi1>, vector<4x16x16xf32>
    %cst_9 = arith.constant dense<0xFF800000> : vector<4x16xf32>
    %43 = vector.multi_reduction <maximumf>, %42, %cst_9 [2] : vector<4x16x16xf32> to vector<4x16xf32>
    %44 = vector.shape_cast %43 : vector<4x16xf32> to vector<4x16x1xf32>
    %45 = vector.broadcast %44 : vector<4x16x1xf32> to vector<4x16x16xf32>
    %46 = arith.subf %42, %45 : vector<4x16x16xf32>
    %47 = math.exp %46 : vector<4x16x16xf32>
    %cst_10 = arith.constant dense<0.000000e+00> : vector<4x16xf32>
    %48 = vector.multi_reduction <add>, %47, %cst_10 [2] : vector<4x16x16xf32> to vector<4x16xf32>
    %49 = vector.shape_cast %48 : vector<4x16xf32> to vector<4x16x1xf32>
    %50 = tpu.reciprocal %49 {approx = true} : vector<4x16x1xf32> -> vector<4x16x1xf32>
    %51 = vector.broadcast %50 : vector<4x16x1xf32> to vector<4x16x16xf32>
    %52 = arith.mulf %47, %51 : vector<4x16x16xf32>
    %53 = arith.truncf %52 : vector<4x16x16xf32> to vector<4x16x16xbf16>
    "tpu.trace_start"() <{level = 10 : i32, message = "bqk,bkd->bqd"}> : () -> ()
    %cst_11 = arith.constant dense<0.000000e+00> : vector<4x16x32xf32>
    %54 = tpu.matmul %53, %33, %cst_11 {dimension_numbers = #tpu.dot_dimension_numbers<[2], [1], [1], [2], [0, 0, 0, 1, 1, 2], [0], [0]>} : vector<4x16x16xbf16>, vector<4x16x32xbf16>, vector<4x16x32xf32> -> vector<4x16x32xf32>
    "tpu.trace_stop"() : () -> ()
    %55 = vector.extract_strided_slice %54 {offsets = [0, 0, 0], sizes = [1, 16, 32], strides = [1, 1, 1]} : vector<4x16x32xf32> to vector<1x16x32xf32>
    %56 = vector.shape_cast %55 : vector<1x16x32xf32> to vector<16x32xf32>
    %57 = vector.extract_strided_slice %54 {offsets = [1, 0, 0], sizes = [1, 16, 32], strides = [1, 1, 1]} : vector<4x16x32xf32> to vector<1x16x32xf32>
    %58 = vector.shape_cast %57 : vector<1x16x32xf32> to vector<16x32xf32>
    %59 = vector.extract_strided_slice %54 {offsets = [2, 0, 0], sizes = [1, 16, 32], strides = [1, 1, 1]} : vector<4x16x32xf32> to vector<1x16x32xf32>
    %60 = vector.shape_cast %59 : vector<1x16x32xf32> to vector<16x32xf32>
    %61 = vector.extract_strided_slice %54 {offsets = [3, 0, 0], sizes = [1, 16, 32], strides = [1, 1, 1]} : vector<4x16x32xf32> to vector<1x16x32xf32>
    %62 = vector.shape_cast %61 : vector<1x16x32xf32> to vector<16x32xf32>
    %63 = tpu.concatenate %56, %58, %60, %62 in 1 : vector<16x32xf32>, vector<16x32xf32>, vector<16x32xf32>, vector<16x32xf32> -> vector<16x128xf32>
    %64 = arith.truncf %63 : vector<16x128xf32> to vector<16x128xbf16>
    %c0_12 = arith.constant 0 : index
    %c0_13 = arith.constant 0 : index
    %65 = vector.load %arg4[%c0_12, %c0_13] : memref<128x128xbf16, #tpu.memory_space<vmem>>, vector<128x128xbf16>
    %cst_14 = arith.constant dense<0.000000e+00> : vector<16x128xf32>
    %66 = tpu.matmul %64, %65, %cst_14 {dimension_numbers = #tpu.dot_dimension_numbers<[1], [0], [0], [1], [0, 0, 1, 1], [], []>} : vector<16x128xbf16>, vector<128x128xbf16>, vector<16x128xf32> -> vector<16x128xf32>
    %c0_15 = arith.constant 0 : index
    %c0_16 = arith.constant 0 : index
    %67 = vector.load %arg5[%c0_15, %c0_16] : memref<1x128xf32, #tpu.memory_space<vmem>>, vector<1x128xf32>
    %68 = vector.broadcast %67 : vector<1x128xf32> to vector<16x128xf32>
    %69 = arith.addf %66, %68 : vector<16x128xf32>
    %70 = vector.shape_cast %69 : vector<16x128xf32> to vector<1x16x128xf32>
    %c0_17 = arith.constant 0 : index
    %c0_18 = arith.constant 0 : index
    %c0_19 = arith.constant 0 : index
    %71 = vector.load %arg6[%c0_17, %c0_18, %c0_19] : memref<1x16x128xf32, #tpu.memory_space<vmem>>, vector<1x16x128xf32>
    tpu.vector_store %arg6[%c0_17, %c0_18, %c0_19], %70 {strides = array<i32>} : memref<1x16x128xf32, #tpu.memory_space<vmem>>, vector<1x16x128xf32>,
    return
  }
  func.func @transform_0(%arg0: i32) -> (i32, i32, i32) {
    %c0_i32 = arith.constant 0 : i32
    %c0_i32_0 = arith.constant 0 : i32
    %c0_i32_1 = arith.constant 0 : i32
    return %arg0, %c0_i32, %c0_i32_0 : i32, i32, i32
  }
  func.func @transform_1(%arg0: i32) -> (i32, i32) {
    %c0_i32 = arith.constant 0 : i32
    %c0_i32_0 = arith.constant 0 : i32
    %c0_i32_1 = arith.constant 0 : i32
    return %c0_i32, %c0_i32_0 : i32, i32
  }
  func.func @transform_2(%arg0: i32) -> (i32, i32) {
    %c0_i32 = arith.constant 0 : i32
    %c0_i32_0 = arith.constant 0 : i32
    %c0_i32_1 = arith.constant 0 : i32
    return %c0_i32, %c0_i32_0 : i32, i32
  }
  func.func @transform_3(%arg0: i32) -> (i32, i32) {
    %c0_i32 = arith.constant 0 : i32
    %c0_i32_0 = arith.constant 0 : i32
    %c0_i32_1 = arith.constant 0 : i32
    return %c0_i32, %c0_i32_0 : i32, i32
  }
  func.func @transform_4(%arg0: i32) -> (i32, i32) {
    %c0_i32 = arith.constant 0 : i32
    %c0_i32_0 = arith.constant 0 : i32
    %c0_i32_1 = arith.constant 0 : i32
    return %c0_i32, %c0_i32_0 : i32, i32
  }
  func.func @transform_5(%arg0: i32) -> (i32, i32, i32) {
    %c0_i32 = arith.constant 0 : i32
    %c0_i32_0 = arith.constant 0 : i32
    %c0_i32_1 = arith.constant 0 : i32
    return %arg0, %c0_i32, %c0_i32_0 : i32, i32, i32
  }
}

</mosaic_0001>

<bundles_post_ra>
// kernel: tpu_custom_call.1
= control target key start
LH: loop header
LB: loop body
LE: loop exit
PB: predicated region body
PF: predicated region fallthrough
CT: control target
= control target key end

     0   :  { %10 = vsyncpa [#allocation3], 0  ;;  %s2070_s0 = inlined_call_operand.hbm [shape: f32[2,16,128], index: 0, kind: input, shape index: {}]   ;;  %s2071_s1 = inlined_call_operand.hbm [shape: bf16[128,384], index: 1, kind: input, shape index: {}]   ;;  %s2072_s2 = inlined_call_operand.hbm [shape: f32[1,384], index: 2, kind: input, shape index: {}]   ;;  %s2073_s3 = inlined_call_operand.hbm [shape: bf16[128,128], index: 3, kind: input, shape index: {}]   ;;  %s2074_s4 = inlined_call_operand.vmem [shape: f32[1,128], index: 4, kind: input, shape index: {}]   ;;  %s2075_s5 = inlined_call_operand.hbm [shape: f32[2,16,128], index: 5, kind: output, shape index: {}]  }
   0x1   :  { %12 = vsyncpa [#allocation3 + $0x1], 0 }
   0x2   :  { %13 = vsyncpa [#allocation6], 0 }
   0x3   :  { %14 = vsyncpa [#allocation9], 0 }
   0x4   :  { %15 = vsyncpa [#allocation4], 0 }
   0x5   :  { %17 = vsyncpa [#allocation4 + $0x1], 0  ;;  %s1788_s18 = smov 0   ;;  %s1790_s19 = smov 0  }
   0x6   :  { %s1792_s20 = smov 0   ;;  %s1794_s21 = smov 0  }
   0x7 LB: > { %s1809_s22 = sadd.s32 4294967295, %s1742_s21   ;;  %s1177_s23 = sadd.s32 4294967294, %s1742_s21   ;;  %s1742_s21 = sphi %s1794_s21, %s2086_s21   ;;  %s1738_s20 = sphi %s1792_s20, %s2085_s20   ;;  %s1734_s19 = sphi %s1790_s19, %s2084_s19   ;;  %s1730_s18 = sphi %s1788_s18, %s2083_s18  }
   0x8   : > { %p43_p0 = scmp.ne.s32.totalorder %s1734_s19, %s1730_s18  ;;  %p44_p1 = scmp.eq.s32.totalorder %s1809_s22, 0 }
   0x9   : > { %p151_p2 = scmp.eq.s32.totalorder %s1809_s22, 1  ;;  %p157_p3 = scmp.eq.s32.totalorder %s1177_s23, 1 }
   0xa   : > { %p1818_p4 = por %p44_p1, %p43_p0  ;;  %p1178_p5 = scmp.ge.s32.totalorder %s1742_s21, 1 }
   0xb   : > { %p1823_p6 = por %p157_p3, %p43_p0  ;;  %p164_p7 = scmp.lt.s32.totalorder %s1742_s21, 3 }
   0xc   : > { %s175_s28 = sshll.u32 %s2071_s1, 4  ;;  %s1744_s30 = smov [#allocation5]   ;;  %s176_s28 = int_to_ptr.hbm [resolvable:$true] %s175_s28 }
   0xd   : > { %p1831_p8 = pnand %p1178_p5, %p164_p7  ;;  %s177_s6 = sshll.u32 %s1744_s30, 4  ;;  %s178_s6 = int_to_ptr.vmem [resolvable:$true] %s177_s6 }
   0xe   : > { %s190_s10 = sshll.u32 %s2072_s2, 4  ;;  %s1745_s11 = smov 192   ;;  %s191_s10 = int_to_ptr.hbm [resolvable:$true] %s190_s10 }
   0xf   : > { %p1383_p9 = pneg %p1831_p8  ;;  %s1746_s12 = smov 12  }
  0x10   : > { %s1747_s13 = smov [#allocation7]   ;;  %s201_s17 = sshll.u32 %s2073_s3, 4  ;;  %s202_s17 = int_to_ptr.hbm [resolvable:$true] %s201_s17 }
  0x11   : > { %p1839_p10 = pnand %p1383_p9, %p44_p1  ;;  %s192_s14 = sshll.u32 %s1747_s13, 4  ;;  %s193_s14 = int_to_ptr.vmem [resolvable:$true] %s192_s14 }
  0x12   : > { %s1748_s23 = smov [#allocation8]   ;;  %s1749_s27 = smov 64  }
  0x13   : > { %1386 = dma.hbm_to_vmem [thread:$0]  (!%p1839_p10), %s176_s28, 3072, %s178_s6, [#allocation6], %s1745_s11, %s1745_s11, %s1746_s12  }
  0x14   : > { %1389 = dma.hbm_to_vmem [thread:$0]  (!%p1839_p10), %s191_s10, 48, %s193_s14, [#allocation6]  }
  0x15   : > { %s203_s26 = sshll.u32 %s1748_s23, 4  ;;  %s1750_s28 = smov 4   ;;  %s204_s26 = int_to_ptr.vmem [resolvable:$true] %s203_s26 }
  0x16   : > { %1392 = dma.hbm_to_vmem [thread:$0]  (!%p1839_p10), %s202_s17, 1024, %s204_s26, [#allocation9], %s1749_s27, %s1749_s27, %s1750_s28  }
  0x17   : > { %s1857_s30 = sadd.s32 1, %s1742_s21   ;;  %s30_s8 = sadd.s32 1, %s1738_s20 }
  0x18   : > { %s27_s6 = ssub.s32 %s1742_s21, %s1857_s30  ;;  %p37_p13 = scmp.ne.s32.totalorder %s1738_s20, %s1734_s19 }
  0x19   : > { %p28_p12 = scmp.eq.s32.totalorder %s27_s6, 0  ;;  %p38_p0 = scmp.eq.s32.totalorder %s1742_s21, 0 }
  0x1a   : > { %p1404_p3 = scmp.lt.s32.totalorder %s1742_s21, 2  ;;  %p1871_p7 = por %p151_p2, %p37_p13 }
  0x1b   : > { %s1867_s9 = scalar_select %p28_p12, %s1738_s20, %s30_s8  }
  0x1c   : > { %p39_p5 = por %p38_p0, %p37_p13  ;;  %s220_s7 = sand.u32 1, %s1738_s20  }
  0x1d   : > { %s1333_s11 = sshll.u32 %s1742_s21, 4  ;;  %s1183_s12 = sshll.u32 %s220_s7, 4 }
  0x1e   : > { %s229_s15 = scalar_lea.hbm %s2070_s0, %s1333_s11  ;;  %s224_s17 = scalar_lea.vmem [#allocation2], %s1183_s12 }
  0x1f   : > { %s230_s16 = sshll.u32 %s229_s15, 4  ;;  %s232_s23 = sshll.u32 %s224_s17, 4  ;;  %s231_s16 = int_to_ptr.hbm [resolvable:$true] %s230_s16  ;;  %s233_s23 = int_to_ptr.vmem [resolvable:$true] %s232_s23 }
  0x20   : > { %p1882_p9 = pnand %p1404_p3, %p39_p5  ;;  %s221_s27 = scalar_lea.sflag [#allocation3], %s220_s7 }
  0x21   : > { %s1638_s28 = sshra.s32 %s231_s16, 4  ;;  %s1645_s12 = scalar_lea.hbm %s2070_s0, 32  ;;  %s1639_s28 = int_to_ptr.hbm [resolvable:$true] %s1638_s28 }
  0x22   : > { %s1640_s6 = scalar_lea.hbm %s1639_s28, 16  ;;  %p1642_p10 = pneg %p1882_p9 }
  0x23   : > { %p1641_p2 = scmp.ne.s32.totalorder %s1639_s28, %s1640_s6  ;;  %p1646_p0 = scmp.lt.s32.totalorder %s1639_s28, %s2070_s0 }
  0x24   : > { %p1647_p3 = scmp.lt.s32.totalorder %s1645_s12, %s1640_s6 }
  0x25   : > { %p1643_p12 = pnand %p1642_p10, %p1641_p2 }
  0x26   : > { %p1648_p5 = por %p1647_p3, %p1646_p0 }
  0x27   : > { %p1644_p13 = pneg %p1643_p12 }
  0x29   : > { %p1649_p11 = pnand %p1648_p5, %p1644_p13 }
  0x2b   : > { %1652 = shalt.err (!%p1649_p11)
}
  0x2c   : > { %s1751_s7 = smov 128   ;;  %s1752_s15 = smov 8  }
  0x2d   : > { %1396 = dma.hbm_to_vmem [thread:$0]  (!%p1882_p9), %s231_s16, 256, %s233_s23, %s221_s27, %s1751_s7, %s1751_s7, %s1752_s15  }
  0x2e   : > { %244 = sbr.rel (%p1831_p8) target bundleno = 1197 (0x4ad), region = 40  ;;  %s1899_s17 = sand.u32 (!%p1831_p8), 1, %s1734_s19  }
  0x2f   : > { %s1187_s28 = sshll.u32 (!%p1831_p8), %s1899_s17, 4  ;;  %s247_s6 = scalar_lea.sflag (!%p1831_p8), [#allocation3], %s1899_s17 }
  0x30   : > { %s1905_s8 = scalar_lea.vmem (!%p1831_p8), [#allocation2], %s1187_s28 }
  0x33   : > { %1713 = dma.done.wait (%p1818_p4), %s247_s6, 256  }
  0x34   : > { %1715 = vsyncadd (%p1818_p4), %s247_s6, 4294967040 }
  0x35   : > { %1717 = dma.done.wait (%p44_p1), [#allocation6], 3120  }
  0x36   : > { %1719 = vsyncadd (%p44_p1), [#allocation6], 4294964176 }
  0x37   : > { %1721 = dma.done.wait (%p44_p1), [#allocation9], 1024  }
  0x38   : > { %1723 = vsyncadd (%p44_p1), [#allocation9], 4294966272  ;;  %v1278_v0 = vld [vmem:[#allocation5 + $0xa8] sm:$0xf]  ;;  %v1356_v1 = vld [vmem:[#allocation5 + $0xb0] sm:$0xf0] }
  0x39   : > { %v1355_v2 = vld [vmem:[#allocation5 + $0xac] sm:$0xf]  ;;  %v1279_v3 = vor.u32 %v1356_v1, %v1278_v0  ;;  %v1280_v4 = vld [vmem:[#allocation5 + $0xb4] sm:$0xf0]  ;;  %v1266_v5 = vld [vmem:[#allocation5 + $0x90] sm:$0xf] }
  0x3a   : > { %v1353_v6 = vld [vmem:[#allocation5 + $0x98] sm:$0xf0]  ;;  %v1283_v7 = vor.u32 %v1355_v2, %v1280_v4  ;;  %v1352_v8 = vld [vmem:[#allocation5 + $0x94] sm:$0xf]  ;;  %v1268_v9 = vld [vmem:[#allocation5 + $0x9c] sm:$0xf0] }
  0x3b   : > { %465 = vmatpush.bf16.msra.mxu0 %v1279_v3  ;;  %v1267_v10 = vor.u32 %v1353_v6, %v1266_v5  ;;  %v1271_v11 = vor.u32 %v1352_v8, %v1268_v9  ;;  %v1254_v12 = vld [vmem:[#allocation5 + $0x78] sm:$0xf]  ;;  %v1350_v13 = vld [vmem:[#allocation5 + $0x80] sm:$0xf0]  ;;  %v1349_v14 = vld [vmem:[#allocation5 + $0x7c] sm:$0xf] }
  0x3c   : > { %479 = vmatpush.bf16.msra.mxu1 %v1283_v7  ;;  %v1256_v15 = vld [vmem:[#allocation5 + $0x84] sm:$0xf0]  ;;  %v1255_v16 = vor.u32 %v1350_v13, %v1254_v12  ;;  %v1242_v18 = vld [vmem:[#allocation5 + $0x60] sm:$0xf]  ;;  %v1347_v19 = vld [vmem:[#allocation5 + $0x68] sm:$0xf0] }
  0x3d   : > { %v1259_v17 = vor.u32 %v1349_v14, %v1256_v15  ;;  %v1346_v20 = vld [vmem:[#allocation5 + $0x64] sm:$0xf]  ;;  %v1244_v21 = vld [vmem:[#allocation5 + $0x6c] sm:$0xf0]  ;;  %v1243_v22 = vor.u32 %v1347_v19, %v1242_v18  ;;  %v1230_v24 = vld [vmem:[#allocation5 + $0x48] sm:$0xf] }
  0x3e   : > { %v1247_v23 = vor.u32 %v1346_v20, %v1244_v21  ;;  %v1344_v25 = vld [vmem:[#allocation5 + $0x50] sm:$0xf0]  ;;  %v1343_v26 = vld [vmem:[#allocation5 + $0x4c] sm:$0xf]  ;;  %v1232_v27 = vld [vmem:[#allocation5 + $0x54] sm:$0xf0] }
  0x3f   : > { %466 = vmatpush.bf16.msra.mxu0 %v1267_v10  ;;  %v1231_v28 = vor.u32 %v1344_v25, %v1230_v24  ;;  %v1235_v29 = vor.u32 %v1343_v26, %v1232_v27  ;;  %v1218_v30 = vld [vmem:[#allocation5 + $0x30] sm:$0xf]  ;;  %v1341_v31 = vld [vmem:[#allocation5 + $0x38] sm:$0xf0]  ;;  %v1340_v32 = vld [vmem:[#allocation5 + $0x34] sm:$0xf] }
  0x40   : > { %480 = vmatpush.bf16.msra.mxu1 %v1271_v11  ;;  %v1220_v33 = vld [vmem:[#allocation5 + $0x3c] sm:$0xf0]  ;;  %v1219_v34 = vor.u32 %v1341_v31, %v1218_v30  ;;  %v1206_v36 = vld [vmem:[#allocation5 + $0x18] sm:$0xf]  ;;  %v1338_v37 = vld [vmem:[#allocation5 + $0x20] sm:$0xf0] }
  0x41   : > { %v1223_v35 = vor.u32 %v1340_v32, %v1220_v33  ;;  %v1337_v38 = vld [vmem:[#allocation5 + $0x1c] sm:$0xf]  ;;  %v1208_v39 = vld [vmem:[#allocation5 + $0x24] sm:$0xf0]  ;;  %v1207_v40 = vor.u32 %v1338_v37, %v1206_v36  ;;  %v1194_v42 = vld [vmem:[#allocation5] sm:$0xf] }
  0x42   : > { %v1211_v41 = vor.u32 %v1337_v38, %v1208_v39  ;;  %v1335_v43 = vld [vmem:[#allocation5 + $0x8] sm:$0xf0]  ;;  %v1334_v44 = vld [vmem:[#allocation5 + $0x4] sm:$0xf]  ;;  %v1196_v45 = vld [vmem:[#allocation5 + $0xc] sm:$0xf0] }
  0x43   : > { %467 = vmatpush.bf16.msra.mxu0 %v1255_v16  ;;  %v1195_v46 = vor.u32 %v1335_v43, %v1194_v42  ;;  %v294_v47 = vld [vmem:[%s1905_s8] sm:$0xff]  ;;  %v295_v48 = vld [vmem:[%s1905_s8 + $0x8] sm:$0xff]  ;;  %v1199_v49 = vor.u32 %v1334_v44, %v1196_v45  ;;  %s1753_s24 = smov 32   ;;  %s1754_s29 = smov 64   ;;  %vm603_vm0 = vcmask 261120   ;;  %vm733_vm2 = vcmask 130048  }
  0x44   : > { %481 = vmatpush.bf16.msra.mxu1 %v1259_v17  ;;  %v1921_v50 = vpack.c.bf16 %v295_v48, %v294_v47  ;;  %v1925_v51 = vld [vmem:[#allocation7] sm:$0x7]  ;;  %s1755_s16 = smov 96   ;;  %vm968_vm4 = vcmask 523264   ;;  %vm971_vm5 = vcmask 785408   ;;  %s1366_s27 = sshll.u32 %s1809_s22, 4 }
  0x45   : > { %v332_v54 = vperm.slane %v1925_v51, 1  ;;  %v331_v55 = vperm.slane %v1925_v51, 0  ;;  %s1071_s13 = scalar_lea.hbm %s2075_s5, %s1366_s27  ;;  %s292_s14 = scalar_lea.vmem [#allocation10], %s1187_s28 }
  0x46   : > { %s1072_s7 = sshll.u32 %s292_s14, 4  ;;  %s1074_s15 = sshll.u32 %s1071_s13, 4  ;;  %s1073_s7 = int_to_ptr.vmem [resolvable:$true] %s1072_s7  ;;  %s1075_s15 = int_to_ptr.hbm [resolvable:$true] %s1074_s15 }
  0x47   : > { %468 = vmatpush.bf16.msra.mxu0 %v1243_v22  ;;  %s1060_s6 = scalar_lea.sflag [#allocation4], %s1899_s17  ;;  %s1682_s8 = sshra.s32 %s1075_s15, 4  ;;  %s1683_s8 = int_to_ptr.hbm [resolvable:$true] %s1682_s8 }
  0x48   : > { %482 = vmatpush.bf16.msra.mxu1 %v1247_v23  ;;  %s1684_s22 = scalar_lea.hbm %s1683_s8, 16  ;;  %s1688_s28 = scalar_lea.hbm %s2075_s5, 32 }
  0x49   : > { %p1685_p1 = scmp.ne.s32.totalorder %s1683_s8, %s1684_s22  ;;  %p1689_p11 = scmp.lt.s32.totalorder %s1683_s8, %s2075_s5 }
  0x4a   : > { %p1690_p9 = scmp.lt.s32.totalorder %s1688_s28, %s1684_s22 }
  0x4b   : > { %469 = vmatpush.bf16.msra.mxu0 %v1231_v28  ;;  %p1686_p4 = pnand %p1685_p1, %p1871_p7 }
  0x4c   : > { %483 = vmatpush.bf16.msra.mxu1 %v1235_v29  ;;  %p1691_p2 = por %p1690_p9, %p1689_p11 }
  0x4d   : > { %p1687_p8 = pneg %p1686_p4 }
  0x4f   : > { %470 = vmatpush.bf16.msra.mxu0 %v1219_v34  ;;  %p1692_p10 = pnand %p1691_p2, %p1687_p8 }
  0x50   : > { %484 = vmatpush.bf16.msra.mxu1 %v1223_v35 }
  0x53   : > { %471 = vmatpush.bf16.msra.mxu0 %v1207_v40 }
  0x54   : > { %485 = vmatpush.bf16.msra.mxu1 %v1211_v41 }
  0x57   : > { %472 = vmatpush.bf16.msra.mxu0 %v1195_v46 }
  0x58   : > { %486 = vmatpush.bf16.msra.mxu1 %v1199_v49 }
  0x5a   : > { %473 = vmatmul.bf16.vlgmr.msra.gmra.mxu0 %v1921_v50 }
  0x5b   : > { %487 = vmatmul.bf16.vlgmr.msra.gmra.mxu1 %v1921_v50 }
  0xd7   : > { %v474_v52 = vpop.f32.mrf.mxu0 }
  0xd8   : > { %v488_v53 = vpop.f32.mrf.mxu1  ;;  %v475_v60 = vadd.f32 %v474_v52, %v331_v55 }
  0xd9   : > { %v489_v56 = vadd.f32 %v488_v53, %v332_v54 }
  0xda   : > { %v507_v2 = vmul.f32 0.17677669, %v475_v60 }
  0xdb   : > { %v557_v62 = vpack.c.bf16 %v489_v56, %v489_v56 }
  0xdc   : > { %v529_v8 = vpack.c.bf16 %v507_v2, %v507_v2 }
  0xdd   : > { %v600_v3 = vunpack.c.l.b16 %v557_v62 }
  0xde   : > { %v595_v11 = vunpack.c.l.b16 %v529_v8 }
  0xdf   : > { %v476_v57 = vpop.f32.mrf.mxu0 }
  0xe0   : > { %v477_v58 = vadd.f32 %v476_v57, %v331_v55  ;;  %v490_v59 = vpop.f32.mrf.mxu1 }
  0xe1   : > { %v491_v61 = vadd.f32 %v490_v59, %v332_v54  ;;  %v714_v59 = vlaneseq }
  0xe2   : > { %v508_v63 = vmul.f32 0.17677669, %v477_v58 }
  0xe3   : > { %v1475_v0 = vpack.i.bf16 %v491_v61, %v489_v56  ;;  %v558_v1 = vpack.c.bf16 %v491_v61, %v491_v61  ;;  %v1942_v62 = vshrl.u32 %v714_v59, 7 }
  0xe4   : > { %v530_v6 = vpack.c.bf16 %v508_v63, %v508_v63  ;;  %v1480_v9 = vpack.i.bf16 %v508_v63, %v507_v2  ;;  %v1944_v63 = vand.u32 127, %v714_v59 }
  0xe5   : > { %1476 = vrot.lane.b32.xlu2 %v1475_v0, %s1753_s24  ;;  %1466 = vrot.lane.b32.xlu1 %v1475_v0, %s1754_s29  ;;  %v601_v4 = vunpack.c.l.b16 %v558_v1 }
  0xe6   : > { %1456 = vrot.lane.b32.xlu0 %v1475_v0, %s1755_s16  ;;  %v596_v10 = vunpack.c.l.b16 %v530_v6  ;;  %vm719_vm1 = vcmp.le.s32.totalorder %v1944_v63, %v1942_v62 }
  0xe7   : > { %v602_v5 = vpack.c.b16 %v601_v4, %v600_v3 }
  0xe8   : > { %v597_v12 = vpack.c.b16 %v596_v10, %v595_v11 }
  0xe9   : > { %v608_v7 = vsel %vm603_vm0, %v602_v5, 0 }
  0xea   : > { %617 = vmatpush.bf16.xpose.msra.mxu3 %v608_v7  ;;  %v1956_v7 = vadd.s32 8, %v1942_v62 }
  0xec   : > { %vm720_vm3 = vcmp.le.s32.totalorder %v1944_v63, %v1956_v7 }
  0xed   : > { %1481 = vrot.lane.b32.xlu2 %v1480_v9, %s1753_s24  ;;  %1471 = vrot.lane.b32.xlu1 %v1480_v9, %s1754_s29 }
  0xee   : > { %1461 = vrot.lane.b32.xlu0 %v1480_v9, %s1755_s16 }
  0xf1   : > { %1288 = vmatmul.msk.bf16.vlgmr.msra.gmra.mxu3 %vm603_vm0, %v597_v12  ;;  %v1286_v12 = vld [vmem:[#allocation5 + $0xb0] sm:$0xf] }
 0x13f   : > { %v1477_v13 = vpop.permute.xlu2 %1476 }
 0x140   : > { %v1479_v14 = vunpack.i.h.bf16 %v1477_v13  ;;  %v1478_v15 = vunpack.i.l.bf16 %v1477_v13  ;;  %v1357_v13 = vld [vmem:[#allocation5 + $0xb8] sm:$0xf0] }
 0x142   : > { %v564_v16 = vpack.c.bf16 %v1479_v14, %v1479_v14  ;;  %v563_v17 = vpack.c.bf16 %v1478_v15, %v1478_v15  ;;  %v1274_v14 = vld [vmem:[#allocation5 + $0x98] sm:$0xf]  ;;  %v1287_v15 = vor.u32 %v1357_v13, %v1286_v12 }
 0x144   : > { %v692_v18 = vunpack.c.l.b16 %v564_v16  ;;  %v691_v19 = vunpack.c.l.b16 %v563_v17  ;;  %v1354_v16 = vld [vmem:[#allocation5 + $0xa0] sm:$0xf0]  ;;  %493 = vmatpush.bf16.msra.mxu2 %v1287_v15 }
 0x145   : > { %v1275_v17 = vor.u32 %v1354_v16, %v1274_v14 }
 0x146   : > { %v693_v20 = vpack.c.b16 %v692_v18, %v691_v19  ;;  %v1262_v18 = vld [vmem:[#allocation5 + $0x80] sm:$0xf]  ;;  %v1351_v19 = vld [vmem:[#allocation5 + $0x88] sm:$0xf0] }
 0x147   : > { %v1482_v21 = vpop.permute.xlu2 %1481 }
 0x148   : > { %v1484_v22 = vunpack.i.h.bf16 %v1482_v21  ;;  %v1483_v23 = vunpack.i.l.bf16 %v1482_v21  ;;  %v698_v24 = vsel %vm603_vm0, %v693_v20, 0  ;;  %494 = vmatpush.bf16.msra.mxu2 %v1275_v17  ;;  %v1263_v20 = vor.u32 %v1351_v19, %v1262_v18  ;;  %v1250_v21 = vld [vmem:[#allocation5 + $0x68] sm:$0xf] }
 0x149   : > { %707 = vmatpush.bf16.xpose.msrb.mxu0 %v698_v24  ;;  %v1238_v24 = vld [vmem:[#allocation5 + $0x50] sm:$0xf] }
 0x14a   : > { %v536_v25 = vpack.c.bf16 %v1484_v22, %v1484_v22  ;;  %v535_v26 = vpack.c.bf16 %v1483_v23, %v1483_v23  ;;  %v1348_v22 = vld [vmem:[#allocation5 + $0x70] sm:$0xf0] }
 0x14b   : > { %v1251_v23 = vor.u32 %v1348_v22, %v1250_v21 }
 0x14c   : > { %v687_v27 = vunpack.c.l.b16 %v536_v25  ;;  %v686_v28 = vunpack.c.l.b16 %v535_v26  ;;  %495 = vmatpush.bf16.msra.mxu2 %v1263_v20  ;;  %v1345_v25 = vld [vmem:[#allocation5 + $0x58] sm:$0xf0] }
 0x14d   : > { %v1239_v26 = vor.u32 %v1345_v25, %v1238_v24 }
 0x14e   : > { %v688_v29 = vpack.c.b16 %v687_v27, %v686_v28  ;;  %v1226_v28 = vld [vmem:[#allocation5 + $0x38] sm:$0xf] }
 0x150   : > { %1291 = vmatmul.msk.bf16.vlgmr.msrb.gmra.mxu0 %vm603_vm0, %v688_v29  ;;  %496 = vmatpush.bf16.msra.mxu2 %v1251_v23  ;;  %v1342_v29 = vld [vmem:[#allocation5 + $0x40] sm:$0xf0] }
 0x154   : > { %497 = vmatpush.bf16.msra.mxu2 %v1239_v26 }
 0x157   : > { %v1467_v30 = vpop.permute.xlu1 %1466 }
 0x158   : > { %v1469_v31 = vunpack.i.h.bf16 %v1467_v30  ;;  %v1468_v32 = vunpack.i.l.bf16 %v1467_v30  ;;  %v1457_v33 = vpop.permute.xlu0 %1456  ;;  %v1227_v30 = vor.u32 %v1342_v29, %v1226_v28 }
 0x159   : > { %v1459_v34 = vunpack.i.h.bf16 %v1457_v33  ;;  %v1458_v35 = vunpack.i.l.bf16 %v1457_v33 }
 0x15a   : > { %v562_v36 = vpack.c.bf16 %v1469_v31, %v1469_v31  ;;  %v561_v37 = vpack.c.bf16 %v1468_v32, %v1468_v32  ;;  %498 = vmatpush.bf16.msra.mxu2 %v1227_v30  ;;  %v1214_v31 = vld [vmem:[#allocation5 + $0x20] sm:$0xf]  ;;  %v1339_v32 = vld [vmem:[#allocation5 + $0x28] sm:$0xf0] }
 0x15b   : > { %v560_v38 = vpack.c.bf16 %v1459_v34, %v1459_v34  ;;  %v559_v39 = vpack.c.bf16 %v1458_v35, %v1458_v35  ;;  %v1215_v33 = vor.u32 %v1339_v32, %v1214_v31  ;;  %v1202_v35 = vld [vmem:[#allocation5 + $0x8] sm:$0xf] }
 0x15c   : > { %v662_v40 = vunpack.c.l.b16 %v562_v36  ;;  %v661_v41 = vunpack.c.l.b16 %v561_v37  ;;  %v1336_v36 = vld [vmem:[#allocation5 + $0x10] sm:$0xf0] }
 0x15d   : > { %v632_v42 = vunpack.c.l.b16 %v560_v38  ;;  %v631_v43 = vunpack.c.l.b16 %v559_v39  ;;  %v1203_v38 = vor.u32 %v1336_v36, %v1202_v35 }
 0x15e   : > { %v663_v44 = vpack.c.b16 %v662_v40, %v661_v41  ;;  %499 = vmatpush.bf16.msra.mxu2 %v1215_v33 }
 0x15f   : > { %v633_v45 = vpack.c.b16 %v632_v42, %v631_v43  ;;  %v1472_v58 = vpop.permute.xlu1 %1471 }
 0x160   : > { %v1462_v46 = vpop.permute.xlu0 %1461  ;;  %v668_v47 = vsel %vm603_vm0, %v663_v44, 0  ;;  %v1474_v60 = vunpack.i.h.bf16 %v1472_v58  ;;  %v1473_v61 = vunpack.i.l.bf16 %v1472_v58 }
 0x161   : > { %v1464_v48 = vunpack.i.h.bf16 %v1462_v46  ;;  %v1463_v49 = vunpack.i.l.bf16 %v1462_v46  ;;  %v638_v52 = vsel %vm603_vm0, %v633_v45, 0 }
 0x162   : > { %647 = vmatpush.bf16.xpose.msrb.mxu3 %v638_v52  ;;  %v534_v0 = vpack.c.bf16 %v1474_v60, %v1474_v60  ;;  %v533_v1 = vpack.c.bf16 %v1473_v61, %v1473_v61  ;;  %500 = vmatpush.bf16.msra.mxu2 %v1203_v38 }
 0x163   : > { %v532_v53 = vpack.c.bf16 %v1464_v48, %v1464_v48  ;;  %v531_v54 = vpack.c.bf16 %v1463_v49, %v1463_v49 }
 0x164   : > { %v657_v2 = vunpack.c.l.b16 %v534_v0  ;;  %v656_v3 = vunpack.c.l.b16 %v533_v1 }
 0x165   : > { %v627_v55 = vunpack.c.l.b16 %v532_v53  ;;  %v626_v56 = vunpack.c.l.b16 %v531_v54  ;;  %501 = vmatmul.bf16.vlgmr.msra.gmra.mxu2 %v1921_v50 }
 0x166   : > { %v658_v8 = vpack.c.b16 %v657_v2, %v656_v3 }
 0x167   : > { %v628_v57 = vpack.c.b16 %v627_v55, %v626_v56 }
 0x169   : > { %1289 = vmatmul.msk.bf16.vlgmr.msrb.gmra.mxu3 %vm603_vm0, %v628_v57 }
 0x16a   : > { %677 = vmatpush.bf16.xpose.msra.mxu3 %v668_v47 }
 0x174   : > { %v619_v4 = vpop.f32.mrf.mxu3 }
 0x175   : > { %v1951_v5 = vsel %vm719_vm1, %v619_v4, -1e+30 }
 0x176   : > { %v734_v6 = vsel %vm733_vm2, %v1951_v5, -inf }
 0x177   : > { %735 = vmax.xlane.f32.xlu0 %v734_v6  ;;  %v333_v6 = vperm.slane %v1925_v51, 2 }
 0x179   : > { %1290 = vmatmul.msk.bf16.vlgmr.msra.gmra.mxu3 %vm603_vm0, %v658_v8 }
 0x17c   : > { %v621_v9 = vpop.f32.mrf.mxu3 }
 0x17d   : > { %v726_v10 = vsel %vm720_vm3, %v621_v9, -1e+30 }
 0x17e   : > { %v737_v11 = vsel %vm733_vm2, %v726_v10, -inf }
 0x17f   : > { %738 = vmax.xlane.f32.xlu1 %v737_v11 }
 0x1cd   : > { %v709_v27 = vpop.f32.mrf.mxu0 }
 0x1ce   : > { %v731_v49 = vsel %vm719_vm1, %v709_v27, -1e+30 }
 0x1cf   : > { %v752_v55 = vsel %vm733_vm2, %v731_v49, -inf }
 0x1d5   : > { %v711_v34 = vpop.f32.mrf.mxu0 }
 0x1d6   : > { %v1968_v37 = vsel %vm720_vm3, %v711_v34, -1e+30 }
 0x1d7   : > { %v755_v39 = vsel %vm733_vm2, %v1968_v37, -inf }
 0x1d8   : > { %756 = vmax.xlane.f32.xlu0 %v755_v39 }
 0x1e8   : > { %v502_v2 = vpop.f32.mrf.mxu2 }
 0x1e9   : > { %v503_v7 = vadd.f32 %v502_v2, %v333_v6 }
 0x1ea   : > { %v736_v50 = vpop.xlane.xlu0 %735 }
 0x1eb   : > { %v758_v53 = vsub.f32 %v1951_v5, %v736_v50  ;;  %v585_v11 = vpack.c.bf16 %v503_v7, %v503_v7 }
 0x1ec   : > { %v649_v40 = vpop.f32.mrf.mxu3 }
 0x1ed   : > { %v727_v41 = vsel %vm719_vm1, %v649_v40, -1e+30  ;;  %v766_v57 = vmul.f32 1.442695, %v758_v53  ;;  %v837_v14 = vunpack.c.l.b16 %v585_v11 }
 0x1ee   : > { %v740_v42 = vsel %vm733_vm2, %v727_v41, -inf }
 0x1ef   : > { %741 = vmax.xlane.f32.xlu2 %v740_v42 }
 0x1f0   : > { %v504_v63 = vpop.f32.mrf.mxu2 }
 0x1f1   : > { %v505_v8 = vadd.f32 %v504_v63, %v333_v6 }
 0x1f2   : > { %v739_v43 = vpop.xlane.xlu1 %738 }
 0x1f3   : > { %v759_v45 = vsub.f32 %v726_v10, %v739_v43  ;;  %v586_v12 = vpack.c.bf16 %v505_v8, %v505_v8 }
 0x1f4   : > { %v651_v44 = vpop.f32.mrf.mxu3 }
 0x1f5   : > { %v728_v46 = vsel %vm720_vm3, %v651_v44, -1e+30  ;;  %v768_v48 = vmul.f32 1.442695, %v759_v45  ;;  %v838_v15 = vunpack.c.l.b16 %v586_v12 }
 0x1f6   : > { %v743_v47 = vsel %vm733_vm2, %v728_v46, -inf }
 0x1f7   : > { %744 = vmax.xlane.f32.xlu2 %v743_v47  ;;  %1516 = vpow2.f32 %v768_v48  ;;  %v839_v19 = vpack.c.b16 %v838_v15, %v837_v14 }
 0x1f8   : > { %1518 = vpow2.f32 %v766_v57 }
 0x1f9   : > { %851 = vmatpush.bf16.msrb.mxu2 %v839_v19 }
 0x1fc   : > { %v679_v52 = vpop.f32.mrf.mxu3 }
 0x1fd   : > { %v729_v54 = vsel %vm719_vm1, %v679_v52, -1e+30  ;;  %v1990_v58 = vpop.eup %1516 }
 0x1fe   : > { %v746_v56 = vsel %vm733_vm2, %v729_v54, -inf  ;;  %v785_v61 = vsel %vm733_vm2, %v1990_v58, 0.0  ;;  %v1519_v0 = vpop.eup %1518 }
 0x1ff   : > { %753 = vmax.xlane.f32.xlu2 %v752_v55  ;;  %747 = vmax.xlane.f32.xlu0 %v746_v56  ;;  %v782_v1 = vsel %vm733_vm2, %v1519_v0, 0.0 }
 0x204   : > { %v681_v59 = vpop.f32.mrf.mxu3 }
 0x205   : > { %v730_v60 = vsel %vm720_vm3, %v681_v59, -1e+30 }
 0x206   : > { %v749_v62 = vsel %vm733_vm2, %v730_v60, -inf }
 0x207   : > { %786 = vadd.xlane.f32.xlu2 %v785_v61  ;;  %750 = vmax.xlane.f32.xlu1 %v749_v62 }
 0x20f   : > { %783 = vadd.xlane.f32.xlu1 %v782_v1 }
 0x24b   : > { %v757_v9 = vpop.xlane.xlu0 %756 }
 0x24c   : > { %v765_v23 = vsub.f32 %v1968_v37, %v757_v9 }
 0x24e   : > { %v780_v28 = vmul.f32 1.442695, %v765_v23 }
 0x262   : > { %v742_v3 = vpop.xlane.xlu2 %741 }
 0x263   : > { %v760_v4 = vsub.f32 %v727_v41, %v742_v3 }
 0x265   : > { %v770_v5 = vmul.f32 1.442695, %v760_v4 }
 0x267   : > { %1520 = vpow2.f32 %v770_v5 }
 0x26a   : > { %v745_v10 = vpop.xlane.xlu2 %744 }
 0x26b   : > { %v761_v13 = vsub.f32 %v728_v46, %v745_v10 }
 0x26d   : > { %v2000_v16 = vpop.eup %1520  ;;  %v772_v17 = vmul.f32 1.442695, %v761_v13 }
 0x26e   : > { %v788_v18 = vsel %vm733_vm2, %v2000_v16, 0.0 }
 0x26f   : > { %1522 = vpow2.f32 %v772_v17  ;;  %789 = vadd.xlane.f32.xlu0 %v788_v18 }
 0x272   : > { %v754_v51 = vpop.xlane.xlu2 %753  ;;  %v748_v20 = vpop.xlane.xlu0 %747 }
 0x273   : > { %v764_v21 = vsub.f32 %v731_v49, %v754_v51  ;;  %v762_v22 = vsub.f32 %v729_v54, %v748_v20  ;;  %v1485_v49 = vpack.i.bf16 %v505_v8, %v503_v7 }
 0x275   : > { %v1523_v24 = vpop.eup %1522  ;;  %v778_v25 = vmul.f32 1.442695, %v764_v21  ;;  %v774_v26 = vmul.f32 1.442695, %v762_v22 }
 0x276   : > { %v791_v27 = vsel %vm733_vm2, %v1523_v24, 0.0 }
 0x277   : > { %1524 = vpow2.f32 %v778_v25  ;;  %792 = vadd.xlane.f32.xlu1 %v791_v27 }
 0x278   : > { %1526 = vpow2.f32 %v774_v26 }
 0x279   : > { %1528 = vpow2.f32 %v780_v28 }
 0x27a   : > { %v787_v29 = vpop.xlane.xlu2 %786  ;;  %v751_v30 = vpop.xlane.xlu1 %750 }
 0x27b   : > { %1530 = vrcp.f32 %v787_v29  ;;  %v763_v32 = vsub.f32 %v730_v60, %v751_v30 }
 0x27d   : > { %v2006_v31 = vpop.eup %1524  ;;  %v776_v36 = vmul.f32 1.442695, %v763_v32 }
 0x27e   : > { %v1527_v33 = vpop.eup %1526  ;;  %v800_v34 = vsel %vm733_vm2, %v2006_v31, 0.0 }
 0x27f   : > { %801 = vadd.xlane.f32.xlu0 %v800_v34  ;;  %v794_v35 = vsel %vm733_vm2, %v1527_v33, 0.0  ;;  %v2011_v37 = vpop.eup %1528 }
 0x280   : > { %795 = vadd.xlane.f32.xlu2 %v794_v35  ;;  %v803_v41 = vsel %vm733_vm2, %v2011_v37, 0.0 }
 0x281   : > { %v1531_v39 = vpop.eup %1530 }
 0x282   : > { %v784_v38 = vpop.xlane.xlu1 %783  ;;  %v815_v40 = vmul.f32 %v1531_v39, %v1990_v58 }
 0x283   : > { %1532 = vrcp.f32 %v784_v38 }
 0x284   : > { %1534 = vpow2.f32 %v776_v36  ;;  %v823_v43 = vpack.c.bf16 %v815_v40, %v815_v40 }
 0x286   : > { %v833_v47 = vunpack.c.l.b16 %v823_v43 }
 0x287   : > { %804 = vadd.xlane.f32.xlu0 %v803_v41 }
 0x289   : > { %v1533_v42 = vpop.eup %1532 }
 0x28a   : > { %v814_v44 = vmul.f32 %v1533_v42, %v1519_v0  ;;  %v1535_v45 = vpop.eup %1534 }
 0x28b   : > { %v797_v50 = vsel %vm733_vm2, %v1535_v45, 0.0 }
 0x28c   : > { %v822_v46 = vpack.c.bf16 %v814_v44, %v814_v44 }
 0x28e   : > { %v832_v48 = vunpack.c.l.b16 %v822_v46 }
 0x28f   : > { %798 = vadd.xlane.f32.xlu0 %v797_v50 }
 0x290   : > { %1486 = vrot.lane.b32.xlu1 %v1485_v49, %s1755_s16  ;;  %v834_v52 = vpack.c.b16 %v833_v47, %v832_v48 }
 0x292   : > { %1292 = vmatmul.msk.bf16.vlgmr.msrb.gmra.mxu2 %vm733_vm2, %v834_v52 }
 0x298   : > { %1491 = vrot.lane.b32.xlu2 %v1485_v49, %s1754_s29 }
 0x2a3   : > { %1496 = vrot.lane.b32.xlu0 %v1485_v49, %s1753_s24 }
 0x2e2   : > { %v790_v53 = vpop.xlane.xlu0 %789 }
 0x2ea   : > { %v793_v56 = vpop.xlane.xlu1 %792 }
 0x2eb   : > { %1536 = vrcp.f32 %v793_v56 }
 0x2ec   : > { %1538 = vrcp.f32 %v790_v53 }
 0x2f1   : > { %v1537_v61 = vpop.eup %1536 }
 0x2f2   : > { %v802_v54 = vpop.xlane.xlu0 %801  ;;  %v1539_v1 = vpop.eup %1538  ;;  %v817_v2 = vmul.f32 %v1537_v61, %v1523_v24  ;;  %v1361_v61 = vld [vmem:[#allocation8 + $0x18] sm:$0xff] }
 0x2f3   : > { %v796_v55 = vpop.xlane.xlu2 %795  ;;  %v816_v5 = vmul.f32 %v1539_v1, %v2000_v16  ;;  %v1358_v1 = vld [vmem:[#allocation8] sm:$0xff] }
 0x2f4   : > { %1540 = vrcp.f32 %v796_v55  ;;  %v825_v11 = vpack.c.bf16 %v817_v2, %v817_v2 }
 0x2f5   : > { %v824_v14 = vpack.c.bf16 %v816_v5, %v816_v5 }
 0x2f6   : > { %v861_v19 = vunpack.c.l.b16 %v825_v11 }
 0x2f7   : > { %v860_v21 = vunpack.c.l.b16 %v824_v14 }
 0x2f9   : > { %v862_v23 = vpack.c.b16 %v861_v19, %v860_v21 }
 0x2fa   : > { %v805_v57 = vpop.xlane.xlu0 %804  ;;  %v1541_v8 = vpop.eup %1540 }
 0x2fb   : > { %v1492_v58 = vpop.permute.xlu2 %1491  ;;  %v818_v15 = vmul.f32 %v1541_v8, %v1527_v33 }
 0x2fc   : > { %v1494_v59 = vunpack.i.h.bf16 %v1492_v58  ;;  %v1493_v60 = vunpack.i.l.bf16 %v1492_v58  ;;  %v1364_v58 = vld [vmem:[#allocation8 + $0x30] sm:$0xff] }
 0x2fd   : > { %v826_v16 = vpack.c.bf16 %v818_v15, %v818_v15 }
 0x2fe   : > { %v590_v62 = vpack.c.bf16 %v1494_v59, %v1494_v59  ;;  %v589_v0 = vpack.c.bf16 %v1493_v60, %v1493_v60  ;;  %v1363_v59 = vld [vmem:[#allocation8 + $0x28] sm:$0xff]  ;;  %v1362_v60 = vld [vmem:[#allocation8 + $0x20] sm:$0xff] }
 0x2ff   : > { %v888_v25 = vunpack.c.l.b16 %v826_v16 }
 0x300   : > { %v894_v3 = vunpack.c.l.b16 %v590_v62  ;;  %v893_v4 = vunpack.c.l.b16 %v589_v0  ;;  %v1360_v62 = vld [vmem:[#allocation8 + $0x10] sm:$0xff]  ;;  %v1359_v0 = vld [vmem:[#allocation8 + $0x8] sm:$0xff] }
 0x302   : > { %v895_v6 = vpack.c.b16 %v894_v3, %v893_v4  ;;  %v799_v63 = vpop.xlane.xlu0 %798  ;;  %v1487_v7 = vpop.permute.xlu1 %1486 }
 0x303   : > { %1542 = vrcp.f32 %v799_v63  ;;  %v1489_v9 = vunpack.i.h.bf16 %v1487_v7  ;;  %v1488_v10 = vunpack.i.l.bf16 %v1487_v7 }
 0x304   : > { %907 = vmatpush.bf16.msrb.mxu3 %v895_v6  ;;  %1544 = vrcp.f32 %v805_v57  ;;  %v1365_v57 = vld [vmem:[#allocation8 + $0x38] sm:$0xff] }
 0x305   : > { %v588_v12 = vpack.c.bf16 %v1489_v9, %v1489_v9  ;;  %v587_v13 = vpack.c.bf16 %v1488_v10, %v1488_v10  ;;  %1546 = vrcp.f32 %v802_v54  ;;  %1043 = vmatpush.bf16.msrb.mxu1 %v1365_v57 }
 0x307   : > { %v866_v17 = vunpack.c.l.b16 %v588_v12  ;;  %v865_v18 = vunpack.c.l.b16 %v587_v13 }
 0x309   : > { %v1543_v51 = vpop.eup %1542  ;;  %v867_v20 = vpack.c.b16 %v866_v17, %v865_v18  ;;  %1044 = vmatpush.bf16.msrb.mxu1 %v1364_v58  ;;  %v1515_v18 = vld [vmem:[%s2074_s4] ss:$0 sm:$0xff] }
 0x30a   : > { %v819_v22 = vmul.f32 %v1543_v51, %v1535_v45  ;;  %v1545_v27 = vpop.eup %1544 }
 0x30b   : > { %879 = vmatpush.bf16.msra.mxu2 %v867_v20  ;;  %v1547_v29 = vpop.eup %1546  ;;  %v821_v30 = vmul.f32 %v1545_v27, %v2011_v37 }
 0x30c   : > { %v827_v24 = vpack.c.bf16 %v819_v22, %v819_v22  ;;  %v820_v32 = vmul.f32 %v1547_v29, %v2006_v31 }
 0x30d   : > { %v829_v36 = vpack.c.bf16 %v821_v30, %v821_v30  ;;  %1045 = vmatpush.bf16.msrb.mxu1 %v1363_v59 }
 0x30e   : > { %v889_v26 = vunpack.c.l.b16 %v827_v24  ;;  %1293 = vmatmul.msk.bf16.vlgmr.msra.gmra.mxu2 %vm733_vm2, %v862_v23  ;;  %v828_v40 = vpack.c.bf16 %v820_v32, %v820_v32 }
 0x30f   : > { %v917_v43 = vunpack.c.l.b16 %v829_v36 }
 0x310   : > { %v890_v28 = vpack.c.b16 %v889_v26, %v888_v25  ;;  %v916_v45 = vunpack.c.l.b16 %v828_v40 }
 0x311   : > { %1046 = vmatpush.bf16.msrb.mxu1 %v1362_v60 }
 0x312   : > { %1294 = vmatmul.msk.bf16.vlgmr.msrb.gmra.mxu3 %vm733_vm2, %v890_v28  ;;  %v918_v46 = vpack.c.b16 %v917_v43, %v916_v45 }
 0x315   : > { %v1497_v33 = vpop.permute.xlu0 %1496  ;;  %v853_v47 = vpop.f32.mrf.mxu2  ;;  %1047 = vmatpush.bf16.msrb.mxu1 %v1361_v61 }
 0x316   : > { %v1499_v34 = vunpack.i.h.bf16 %v1497_v33  ;;  %v1498_v35 = vunpack.i.l.bf16 %v1497_v33 }
 0x318   : > { %v592_v38 = vpack.c.bf16 %v1499_v34, %v1499_v34  ;;  %v591_v39 = vpack.c.bf16 %v1498_v35, %v1498_v35 }
 0x319   : > { %1048 = vmatpush.bf16.msrb.mxu1 %v1360_v62 }
 0x31a   : > { %v922_v41 = vunpack.c.l.b16 %v592_v38  ;;  %v921_v42 = vunpack.c.l.b16 %v591_v39 }
 0x31c   : > { %v923_v44 = vpack.c.b16 %v922_v41, %v921_v42 }
 0x31d   : > { %v855_v37 = vpop.f32.mrf.mxu2  ;;  %1049 = vmatpush.bf16.msrb.mxu1 %v1359_v0 }
 0x31e   : > { %935 = vmatpush.bf16.msra.mxu0 %v923_v44 }
 0x321   : > { %1295 = vmatmul.msk.bf16.vlgmr.msra.gmra.mxu0 %vm733_vm2, %v918_v46  ;;  %1050 = vmatpush.bf16.msrb.mxu1 %v1358_v1 }
 0x391   : > { %v881_v48 = vpop.f32.mrf.mxu2 }
 0x395   : > { %v909_v31 = vpop.f32.mrf.mxu3 }
 0x399   : > { %v883_v50 = vpop.f32.mrf.mxu2 }
 0x39a   : > { %v1500_v49 = vpack.i.bf16 %v883_v50, %v881_v48 }
 0x39c   : > { %1501 = vrot.lane.b32.xlu1 %v1500_v49, %s1753_s24 }
 0x39d   : > { %v911_v52 = vpop.f32.mrf.mxu3 }
 0x39e   : > { %v1505_v53 = vpack.i.bf16 %v911_v52, %v909_v31  ;;  %v937_v54 = vpop.f32.mrf.mxu0 }
 0x3a0   : > { %1506 = vrot.lane.b32.xlu2 %v1505_v53, %s1754_s29 }
 0x3a6   : > { %v939_v55 = vpop.f32.mrf.mxu0 }
 0x3a7   : > { %v1510_v56 = vpack.i.bf16 %v939_v55, %v937_v54 }
 0x3a9   : > { %1511 = vrot.lane.b32.xlu1 %v1510_v56, %s1755_s16 }
 0x3fa   : > { %v1507_v5 = vpop.permute.xlu2 %1506 }
 0x3fb   : > { %v1509_v7 = vunpack.i.h.bf16 %v1507_v5  ;;  %v1508_v8 = vunpack.i.l.bf16 %v1507_v5 }
 0x40e   : > { %v1502_v2 = vpop.permute.xlu1 %1501 }
 0x40f   : > { %v1504_v3 = vunpack.i.h.bf16 %v1502_v2  ;;  %v1503_v4 = vunpack.i.l.bf16 %v1502_v2 }
 0x411   : > { %v967_v6 = vsel %vm603_vm0, %v855_v37, %v1504_v3  ;;  %v966_v63 = vsel %vm603_vm0, %v853_v47, %v1503_v4 }
 0x412   : > { %v969_v12 = vsel %vm968_vm4, %v966_v63, %v1508_v8  ;;  %v970_v13 = vsel %vm968_vm4, %v967_v6, %v1509_v7 }
 0x41b   : > { %v1512_v9 = vpop.permute.xlu1 %1511 }
 0x41c   : > { %v1514_v10 = vunpack.i.h.bf16 %v1512_v9  ;;  %v1513_v11 = vunpack.i.l.bf16 %v1512_v9 }
 0x41e   : > { %v972_v14 = vsel %vm971_vm5, %v969_v12, %v1513_v11  ;;  %v973_v15 = vsel %vm971_vm5, %v970_v13, %v1514_v10 }
 0x41f   : > { %v974_v17 = vpack.c.bf16 %v973_v15, %v972_v14 }
 0x421   : > { %1051 = vmatmul.bf16.vlgmr.msrb.gmra.mxu1 %v974_v17 }
 0x49e   : > { %v1052_v19 = vpop.f32.mrf.mxu1 }
 0x49f   : > { %v1053_v51 = vadd.f32 %v1515_v18, %v1052_v19 }
 0x4a1   : > { %1057 = vst [vmem:[%s292_s14] sm:$0xff] %v1053_v51 }
 0x4a6   : > { %v1054_v20 = vpop.f32.mrf.mxu1 }
 0x4a7   : > { %v1055_v21 = vadd.f32 %v1515_v18, %v1054_v20 }
 0x4a9   : > { %1058 = vst [vmem:[%s292_s14 + $0x8] sm:$0xff] %v1055_v21 }
 0x4aa   : > { %1695 = shalt.err (!%p1692_p10)
}
 0x4ab   : > { %s1756_s17 = smov 128   ;;  %s1757_s26 = smov 8  }
 0x4ac   : > { %1381 = dma.vmem_to_hbm [thread:$0]  (%p1871_p7), %s1073_s7, 256, %s1075_s15, %s1060_s6, %s1756_s17, %s1756_s17, %s1757_s26  }
 0x4ad PF: > { %s1089_s27 = sand.u32 1, %s1730_s18   ;;  %p2082_p12 = scmp.ge.s32.totalorder %s1742_s21, 2 }
 0x4ae   : > { %s1090_s11 = scalar_lea.sflag [#allocation4], %s1089_s27 }
 0x4af   : > { %p1398_p13 = pnand %p2082_p12, %p1823_p6 }
 0x4b1   : > { %p1399_p0 = pneg %p1398_p13 }
 0x4b3   : > { %1725 = dma.done.wait (%p1399_p0), %s1090_s11, 256  }
 0x4b4   : > { %1727 = vsyncadd (%p1399_p0), %s1090_s11, 4294967040  ;;  %p20_p3 = scmp.ge.s32.totalorder %s1857_s30, 4   ;;  %s2083_s18 = smov %s1734_s19 }
 0x4b5   : > { %s2084_s19 = smov %s1738_s20  ;;  %s2085_s20 = smov %s1867_s9 }
 0x4b6   : > { %s2086_s21 = smov %s1857_s30  ;;  %22 = sbr.rel (!%p20_p3) target bundleno = 7 (0x7), region = 97 }
 0x4bb   :  { %1096 = vsyncpa [#allocation3], 1 }
 0x4bc   :  { %1098 = vsyncpa [#allocation3 + $0x1], 1 }
 0x4bd   :  { %1099 = vsyncpa [#allocation6], 1 }
 0x4be   :  { %1100 = vsyncpa [#allocation9], 1 }
 0x4bf   :  { %1101 = vsyncpa [#allocation4], 1 }
 0x4c0   :  { %1103 = vsyncpa [#allocation4 + $0x1], 1 }

</bundles_post_ra>
